<compile_context>
chip_gen: v7x
topology: tpu7x:2x2x1
jax: 0.10.0
libtpu: 0.0.40
codegen_flags: <defaults>
</compile_context>

<pallas_src>
import functools

import jax
import jax.numpy as jnp
from jax.experimental import pallas as pl
from jax.experimental.pallas import tpu as pltpu


def _round_up(v, m):
    return -(-v // m) * m


# ---------------------------------------------------------------------------
# In-kernel helpers
# ---------------------------------------------------------------------------
def _pool_block(x_ref, *, hw, base, masked):
    """f32 sum and max over the last axis of a (TB, C, L) VMEM ref.

    `base` is the global spatial offset of lane 0 of this block.  If `masked`
    is True, lanes whose global index is >= hw (grid-edge padding holding
    unspecified data) are excluded from both reductions.  Each 128-lane
    segment is reduced immediately (XLU) so only (TB, C) accumulators are
    carried — vreg pressure stays flat for any HW.
    """
    tb, c, length = x_ref.shape
    n_full = length // 128
    rem = length - n_full * 128

    # Hoisted once; reused by every segment (JAX does not CSE broadcasts).
    lane = (jax.lax.broadcasted_iota(jnp.int32, (1, 1, 128), 2)
            if masked else None)

    sum_acc = jnp.zeros((tb, c), jnp.float32)
    max_acc = jnp.full((tb, c), -jnp.inf, jnp.float32)

    if n_full > 0:
        def body(s, carry):
            s_acc, m_acc = carry
            off = pl.multiple_of(s * 128, 128)
            # NOTE: max is kept in f32 for portability (v5e has no bf16 VPU);
            # a bf16-native max accumulator would shave a few VALU ops on
            # v6e/v7x but changes nothing on the HBM-bound critical path.
            seg = x_ref[:, :, pl.ds(off, 128)].astype(jnp.float32)
            if masked:
                valid = (base + off + lane) < hw
                s_acc = s_acc + jnp.sum(jnp.where(valid, seg, 0.0), axis=-1)
                m_acc = jnp.maximum(
                    m_acc, jnp.max(jnp.where(valid, seg, -jnp.inf), axis=-1))
            else:
                s_acc = s_acc + jnp.sum(seg, axis=-1)
                m_acc = jnp.maximum(m_acc, jnp.max(seg, axis=-1))
            return s_acc, m_acc

        sum_acc, max_acc = jax.lax.fori_loop(
            0, n_full, body, (sum_acc, max_acc), unroll=min(8, n_full))

    if rem > 0:
        # Exact static slice of the ragged tail (only occurs when the block
        # spans the full spatial dim); Mosaic masks the pad lanes internally.
        tail = x_ref[:, :, n_full * 128:length].astype(jnp.float32)
        if masked:
            valid = (base + n_full * 128 + lane[:, :, :rem]) < hw
            sum_acc = sum_acc + jnp.sum(jnp.where(valid, tail, 0.0), axis=-1)
            max_acc = jnp.maximum(
                max_acc, jnp.max(jnp.where(valid, tail, -jnp.inf), axis=-1))
        else:
            sum_acc = sum_acc + jnp.sum(tail, axis=-1)
            max_acc = jnp.maximum(max_acc, jnp.max(tail, axis=-1))

    return sum_acc, max_acc


def _mlp_gate(avg, mxp, w1_ref, w2_ref):
    """sigmoid(fc(avg) + fc(max)) as two independent tiny dot chains (no
    concat/split relayout — the MXU has plenty of slack here)."""
    w1 = w1_ref[...].astype(jnp.float32)          # (C, hid)
    w2 = w2_ref[...].astype(jnp.float32)          # (hid, C)
    ya = jnp.dot(
        jnp.maximum(jnp.dot(avg, w1, preferred_element_type=jnp.float32), 0.0),
        w2, preferred_element_type=jnp.float32)
    ym = jnp.dot(
        jnp.maximum(jnp.dot(mxp, w1, preferred_element_type=jnp.float32), 0.0),
        w2, preferred_element_type=jnp.float32)
    return jax.nn.sigmoid(ya + ym)                # (TB, C) f32


# ---------------------------------------------------------------------------
# Single-pass kernel: whole (C, HW) image slab resident per batch tile.
# ---------------------------------------------------------------------------
def _channel_attention_kernel(x_ref, w1_ref, w2_ref, o_ref, *, hw):
    sum_acc, max_acc = _pool_block(x_ref, hw=hw, base=0, masked=False)
    avg = sum_acc * (1.0 / float(hw))
    attn = _mlp_gate(avg, max_acc, w1_ref, w2_ref).astype(o_ref.dtype)
    # Rescale in the native dtype; the last dim is the full HW so stores stay
    # dense (only the final partial vreg per row is masked).
    o_ref[...] = x_ref[...] * attn[:, :, None]


# ---------------------------------------------------------------------------
# Two-pass fallback kernels (huge C*HW per image).
# ---------------------------------------------------------------------------
def _pool_mlp_kernel(x_ref, w1_ref, w2_ref, attn_ref, sum_sc, max_sc, *,
                     hw, hw_chunk, masked):
    h = pl.program_id(0)

    @pl.when(h == 0)
    def _():
        sum_sc[...] = jnp.zeros_like(sum_sc)
        max_sc[...] = jnp.full_like(max_sc, -jnp.inf)

    s, m = _pool_block(x_ref, hw=hw, base=h * hw_chunk, masked=masked)
    sum_sc[...] = sum_sc[...] + s
    max_sc[...] = jnp.maximum(max_sc[...], m)

    @pl.when(h == pl.num_programs(0) - 1)
    def _():
        avg = sum_sc[...] * (1.0 / float(hw))
        gate = _mlp_gate(avg, max_sc[...], w1_ref, w2_ref)
        attn_ref[...] = gate[:, :, None].astype(attn_ref.dtype)


def _rescale_kernel(x_ref, attn_ref, o_ref):
    o_ref[...] = x_ref[...] * attn_ref[...]       # (1,C,L) * (1,C,1)


# ---------------------------------------------------------------------------
# Wrappers
# ---------------------------------------------------------------------------
def _single_pass_call(x_flat, w1_t, w2_t, *, per_img_vmem, weight_bytes,
                      target_tile_bytes, vmem_cap_bytes):
    b, c, hw = x_flat.shape
    hid = w1_t.shape[1]
    itemsize = x_flat.dtype.itemsize

    # Batch tile: as big as the byte target allows, but keep >=2 (preferably
    # >=4) grid steps so v7x's two TensorCores both get work and the DMA
    # pipeline has something to overlap.
    tb_budget = max(1, target_tile_bytes // per_img_vmem)
    if b >= 4:
        tb_split = pl.cdiv(b, 4)
    elif b >= 2:
        tb_split = pl.cdiv(b, 2)
    else:
        tb_split = 1
    tb = int(max(1, min(b, tb_budget, tb_split)))
    nb = pl.cdiv(b, tb)                           # no "tb divides b" needed

    vmem_needed = 4 * tb * per_img_vmem + 2 * weight_bytes + (4 << 20)
    vmem_limit = int(min(max(vmem_needed, 32 << 20), vmem_cap_bytes))

    cost = pl.CostEstimate(
        flops=8 * b * c * hid + 3 * b * c * hw,
        transcendentals=b * c,
        bytes_accessed=2 * b * c * hw * itemsize + 2 * weight_bytes)

    return pl.pallas_call(
        functools.partial(_channel_attention_kernel, hw=hw),
        out_shape=jax.ShapeDtypeStruct((b, c, hw), x_flat.dtype),
        grid_spec=pltpu.PrefetchScalarGridSpec(
            num_scalar_prefetch=0,
            grid=(nb,),
            in_specs=[
                pl.BlockSpec((tb, c, hw), lambda i: (i, 0, 0)),
                pl.BlockSpec((c, hid), lambda i: (0, 0)),     # resident
                pl.BlockSpec((hid, c), lambda i: (0, 0)),     # resident
            ],
            out_specs=pl.BlockSpec((tb, c, hw), lambda i: (i, 0, 0)),
        ),
        compiler_params=pltpu.CompilerParams(
            dimension_semantics=("parallel",),
            vmem_limit_bytes=vmem_limit),
        cost_estimate=cost,
    )(x_flat, w1_t, w2_t)


def _pick_hw_chunk(hw, rows, itemsize, budget):
    """Largest spatial chunk (multiple of 128, or the full HW) such that a
    (rows, chunk) slab stays near the byte budget."""
    hw_pad = _round_up(hw, 128)
    if hw <= 128 or rows * hw_pad * itemsize <= budget:
        return hw                                 # full dim: always legal
    chunk = max(128, (budget // (rows * itemsize)) // 128 * 128)
    return int(min(chunk, (hw // 128) * 128))


def _two_pass_call(x_flat, w1_t, w2_t, *, weight_bytes, target_tile_bytes,
                   vmem_cap_bytes):
    b, c, hw = x_flat.shape
    hid = w1_t.shape[1]
    itemsize = x_flat.dtype.itemsize
    c_pad = _round_up(c, 8)
    headroom = 4 << 20

    # ----- pass A: pooled avg/max + MLP gate -> attn (B, C, 1) -------------
    chunk_a = _pick_hw_chunk(hw, b * c_pad, itemsize, target_tile_bytes)
    n_a = pl.cdiv(hw, chunk_a)
    masked = (hw % chunk_a) != 0
    tile_a = b * c_pad * _round_up(chunk_a, 128) * itemsize
    vmem_a = int(min(max(4 * tile_a + 2 * weight_bytes + headroom, 32 << 20),
                     vmem_cap_bytes))
    # TODO(synk): if B*C alone is so large that a (B, C, 128) slab exceeds the
    # VMEM budget, pass A additionally needs batch tiling of the accumulators.

    attn = pl.pallas_call(
        functools.partial(_pool_mlp_kernel, hw=hw, hw_chunk=chunk_a,
                          masked=masked),
        out_shape=jax.ShapeDtypeStruct((b, c, 1), x_flat.dtype),
        grid_spec=pltpu.PrefetchScalarGridSpec(
            num_scalar_prefetch=0,
            grid=(n_a,),
            in_specs=[
                pl.BlockSpec((b, c, chunk_a), lambda h: (0, 0, h)),
                pl.BlockSpec((c, hid), lambda h: (0, 0)),
                pl.BlockSpec((hid, c), lambda h: (0, 0)),
            ],
            out_specs=pl.BlockSpec((b, c, 1), lambda h: (0, 0, 0)),
            scratch_shapes=[pltpu.VMEM((b, c), jnp.float32),
                            pltpu.VMEM((b, c), jnp.float32)],
        ),
        compiler_params=pltpu.CompilerParams(
            dimension_semantics=("arbitrary",),
            vmem_limit_bytes=vmem_a),
        cost_estimate=pl.CostEstimate(
            flops=8 * b * c * hid + 2 * b * c * hw,
            transcendentals=b * c,
            bytes_accessed=b * c * hw * itemsize + 2 * weight_bytes),
    )(x_flat, w1_t, w2_t)

    # ----- pass B: tiled rescale x * attn -----------------------------------
    chunk_b = _pick_hw_chunk(hw, c_pad, itemsize, target_tile_bytes)
    n_b = pl.cdiv(hw, chunk_b)
    tile_b = c_pad * _round_up(chunk_b, 128) * itemsize
    vmem_b = int(min(max(4 * tile_b + headroom, 32 << 20), vmem_cap_bytes))

    return pl.pallas_call(
        _rescale_kernel,
        out_shape=jax.ShapeDtypeStruct((b, c, hw), x_flat.dtype),
        grid_spec=pltpu.PrefetchScalarGridSpec(
            num_scalar_prefetch=0,
            grid=(b, n_b),
            in_specs=[
                pl.BlockSpec((1, c, chunk_b), lambda i, h: (i, 0, h)),
                pl.BlockSpec((1, c, 1), lambda i, h: (i, 0, 0)),
            ],
            out_specs=pl.BlockSpec((1, c, chunk_b), lambda i, h: (i, 0, h)),
        ),
        compiler_params=pltpu.CompilerParams(
            dimension_semantics=("parallel", "parallel"),
            vmem_limit_bytes=vmem_b),
        cost_estimate=pl.CostEstimate(
            flops=b * c * hw,
            transcendentals=0,
            bytes_accessed=2 * b * c * hw * itemsize),
    )(x_flat, attn)


def channel_attention(x, w1, w2, *, target_tile_bytes=4 << 20,
                      vmem_cap_bytes=48 << 20, force_two_pass=False):
    """x: (B, C, H, W).  w1: (hid, C), w2: (C, hid) — nn.Linear layouts, no bias.

    vmem_cap_bytes defaults to 48 MiB, safely below v7x's 64 MiB physical
    VMEM (v5e/v6e have 128 MiB, so the cap is conservative there too)."""
    B, C, H, W = x.shape
    HW = H * W
    x_flat = x.reshape(B, C, HW)
    w1_t = jnp.transpose(w1)                      # (C, hid)
    w2_t = jnp.transpose(w2)                      # (hid, C)

    itemsize = x.dtype.itemsize
    per_img_vmem = _round_up(C, 8) * _round_up(HW, 128) * itemsize
    weight_bytes = (w1.size + w2.size) * w1.dtype.itemsize
    headroom = 4 << 20

    single_pass_ok = (4 * per_img_vmem + 2 * weight_bytes + headroom
                      <= vmem_cap_bytes)
    if single_pass_ok and not force_two_pass:
        out_flat = _single_pass_call(
            x_flat, w1_t, w2_t, per_img_vmem=per_img_vmem,
            weight_bytes=weight_bytes, target_tile_bytes=target_tile_bytes,
            vmem_cap_bytes=vmem_cap_bytes)
    else:
        out_flat = _two_pass_call(
            x_flat, w1_t, w2_t, weight_bytes=weight_bytes,
            target_tile_bytes=target_tile_bytes,
            vmem_cap_bytes=vmem_cap_bytes)
    return out_flat.reshape(B, C, H, W)


# ---------------------------------------------------------------------------
# Pure-JAX reference (matches the PyTorch module semantics)
# ---------------------------------------------------------------------------
def _reference(x, w1, w2):
    xf = x.astype(jnp.float32)
    avg = jnp.mean(xf, axis=(2, 3))               # (B, C)
    mx = jnp.max(xf, axis=(2, 3))                 # (B, C)

    def fc(v):
        return jnp.maximum(v @ w1.T, 0.0) @ w2.T

    attn = jax.nn.sigmoid(fc(avg) + fc(mx)).astype(x.dtype)
    return x * attn[:, :, None, None]


if __name__ == "__main__":
    B, C, H, W = 2, 32, 16, 16
    reduction = 8
    hid = C // reduction

    key = jax.random.PRNGKey(0)
    kx, k1, k2, kx2, kx3, kx4 = jax.random.split(key, 6)

    x = jax.random.normal(kx, (B, C, H, W), dtype=jnp.float32)
    # nn.Linear weights: (out_features, in_features), no bias.
    w1 = jax.random.normal(k1, (hid, C), dtype=jnp.float32) * 0.1
    w2 = jax.random.normal(k2, (C, hid), dtype=jnp.float32) * 0.1

    # 1) 128-aligned spatial extent (16*16 = 256 lanes).
    out = jax.block_until_ready(channel_attention(x, w1, w2))
    ref = _reference(x, w1, w2)
    assert out.shape == (B, C, H, W)
    assert jnp.allclose(out, ref, atol=1e-5, rtol=1e-5), "mismatch (aligned)"

    # 2) Non-128-aligned spatial extent (7*7 = 49 lanes): in-kernel ragged tail.
    x2 = jax.random.normal(kx2, (B, C, 7, 7), dtype=jnp.float32)
    out2 = jax.block_until_ready(channel_attention(x2, w1, w2))
    assert jnp.allclose(out2, _reference(x2, w1, w2),
                        atol=1e-5, rtol=1e-5), "mismatch (ragged HW)"

    # 3) Odd batch: cdiv grid with a partial trailing batch tile.
    x3 = jax.random.normal(kx3, (5, C, 16, 16), dtype=jnp.float32)
    out3 = jax.block_until_ready(channel_attention(x3, w1, w2))
    assert jnp.allclose(out3, _reference(x3, w1, w2),
                        atol=1e-5, rtol=1e-5), "mismatch (odd batch)"

    # 4) Two-pass fallback (pool+MLP over HW chunks, then tiled rescale),
    #    forced at small shape so both fallback kernels are exercised.
    x4 = jax.random.normal(kx4, (B, C, 13, 13), dtype=jnp.float32)
    out4 = jax.block_until_ready(channel_attention(
        x4, w1, w2, force_two_pass=True, target_tile_bytes=16 * 1024))
    assert jnp.allclose(out4, _reference(x4, w1, w2),
                        atol=1e-5, rtol=1e-5), "mismatch (two-pass)"

    print("KERNEL_OK")
</pallas_src>

<mosaic_0001>
module attributes {stable_mosaic.version = 11 : i64} {
  func.func @_channel_attention_kernel(%arg0: i32, %arg1: memref<1x32x256xf32, #tpu.memory_space<vmem>>, %arg2: memref<32x4xf32, #tpu.memory_space<vmem>>, %arg3: memref<4x32xf32, #tpu.memory_space<vmem>>, %arg4: memref<1x32x256xf32, #tpu.memory_space<vmem>>) attributes {dimension_semantics = [#tpu.dimension_semantics<parallel>], iteration_bounds = array<i64: 2>, scalar_prefetch = 0 : i64, scratch_operands = 0 : i64, tpu.core_type = #tpu.core_type<tc>, window_params = [{transform_indices = @transform_0, window_bounds = array<i64: 1, 32, 256>}, {pipeline_mode = #tpu.pipeline_mode<synchronous>, transform_indices = @transform_1, window_bounds = array<i64: 32, 4>}, {pipeline_mode = #tpu.pipeline_mode<synchronous>, transform_indices = @transform_2, window_bounds = array<i64: 4, 32>}, {transform_indices = @transform_3, window_bounds = array<i64: 1, 32, 256>}]} {
    %cst = arith.constant 0.000000e+00 : f32
    %0 = vector.broadcast %cst : f32 to vector<1x32xf32>
    %cst_0 = arith.constant 0xFF800000 : f32
    %1 = vector.broadcast %cst_0 : f32 to vector<1x32xf32>
    %c0_i32 = arith.constant 0 : i32
    %c128_i32 = arith.constant 128 : i32
    %2 = arith.muli %c0_i32, %c128_i32 : i32
    %3 = tpu.assume_multiple %2, 128 : i32
    %c0 = arith.constant 0 : index
    %c0_1 = arith.constant 0 : index
    %4 = arith.index_cast %3 : i32 to index
    %5 = vector.load %arg1[%c0, %c0_1, %4] : memref<1x32x256xf32, #tpu.memory_space<vmem>>, vector<1x32x128xf32>
    %cst_2 = arith.constant dense<0.000000e+00> : vector<1x32xf32>
    %6 = vector.multi_reduction <add>, %5, %cst_2 [2] : vector<1x32x128xf32> to vector<1x32xf32>
    %7 = arith.addf %0, %6 : vector<1x32xf32>
    %cst_3 = arith.constant dense<0xFF800000> : vector<1x32xf32>
    %8 = vector.multi_reduction <maximumf>, %5, %cst_3 [2] : vector<1x32x128xf32> to vector<1x32xf32>
    %9 = arith.maximumf %1, %8 : vector<1x32xf32>
    %c1_i32 = arith.constant 1 : i32
    %c128_i32_4 = arith.constant 128 : i32
    %10 = arith.muli %c1_i32, %c128_i32_4 : i32
    %11 = tpu.assume_multiple %10, 128 : i32
    %c0_5 = arith.constant 0 : index
    %c0_6 = arith.constant 0 : index
    %12 = arith.index_cast %11 : i32 to index
    %13 = vector.load %arg1[%c0_5, %c0_6, %12] : memref<1x32x256xf32, #tpu.memory_space<vmem>>, vector<1x32x128xf32>
    %cst_7 = arith.constant dense<0.000000e+00> : vector<1x32xf32>
    %14 = vector.multi_reduction <add>, %13, %cst_7 [2] : vector<1x32x128xf32> to vector<1x32xf32>
    %15 = arith.addf %7, %14 : vector<1x32xf32>
    %cst_8 = arith.constant dense<0xFF800000> : vector<1x32xf32>
    %16 = vector.multi_reduction <maximumf>, %13, %cst_8 [2] : vector<1x32x128xf32> to vector<1x32xf32>
    %17 = arith.maximumf %9, %16 : vector<1x32xf32>
    %c2_i32 = arith.constant 2 : i32
    %cst_9 = arith.constant 3.906250e-03 : f32
    %18 = vector.broadcast %cst_9 : f32 to vector<1x32xf32>
    %19 = arith.mulf %15, %18 : vector<1x32xf32>
    %c0_10 = arith.constant 0 : index
    %c0_11 = arith.constant 0 : index
    %20 = vector.load %arg2[%c0_10, %c0_11] : memref<32x4xf32, #tpu.memory_space<vmem>>, vector<32x4xf32>
    %c0_12 = arith.constant 0 : index
    %c0_13 = arith.constant 0 : index
    %21 = vector.load %arg3[%c0_12, %c0_13] : memref<4x32xf32, #tpu.memory_space<vmem>>, vector<4x32xf32>
    %cst_14 = arith.constant dense<0.000000e+00> : vector<1x4xf32>
    %22 = tpu.matmul %19, %20, %cst_14 {dimension_numbers = #tpu.dot_dimension_numbers<[1], [0], [0], [1], [0, 0, 1, 1], [], []>} : vector<1x32xf32>, vector<32x4xf32>, vector<1x4xf32> -> vector<1x4xf32>
    %cst_15 = arith.constant 0.000000e+00 : f32
    %23 = vector.broadcast %cst_15 : f32 to vector<1x4xf32>
    %24 = arith.maximumf %22, %23 : vector<1x4xf32>
    %cst_16 = arith.constant dense<0.000000e+00> : vector<1x32xf32>
    %25 = tpu.matmul %24, %21, %cst_16 {dimension_numbers = #tpu.dot_dimension_numbers<[1], [0], [0], [1], [0, 0, 1, 1], [], []>} : vector<1x4xf32>, vector<4x32xf32>, vector<1x32xf32> -> vector<1x32xf32>
    %cst_17 = arith.constant dense<0.000000e+00> : vector<1x4xf32>
    %26 = tpu.matmul %17, %20, %cst_17 {dimension_numbers = #tpu.dot_dimension_numbers<[1], [0], [0], [1], [0, 0, 1, 1], [], []>} : vector<1x32xf32>, vector<32x4xf32>, vector<1x4xf32> -> vector<1x4xf32>
    %cst_18 = arith.constant 0.000000e+00 : f32
    %27 = vector.broadcast %cst_18 : f32 to vector<1x4xf32>
    %28 = arith.maximumf %26, %27 : vector<1x4xf32>
    %cst_19 = arith.constant dense<0.000000e+00> : vector<1x32xf32>
    %29 = tpu.matmul %28, %21, %cst_19 {dimension_numbers = #tpu.dot_dimension_numbers<[1], [0], [0], [1], [0, 0, 1, 1], [], []>} : vector<1x4xf32>, vector<4x32xf32>, vector<1x32xf32> -> vector<1x32xf32>
    %30 = arith.addf %25, %29 : vector<1x32xf32>
    %31 = arith.negf %30 : vector<1x32xf32>
    %32 = math.exp %31 : vector<1x32xf32>
    %cst_20 = arith.constant 1.000000e+00 : f32
    %33 = vector.broadcast %cst_20 : f32 to vector<1x32xf32>
    %34 = arith.addf %33, %32 : vector<1x32xf32>
    %35 = arith.divf %33, %34 : vector<1x32xf32>
    %c0_21 = arith.constant 0 : index
    %c0_22 = arith.constant 0 : index
    %c0_23 = arith.constant 0 : index
    %36 = vector.load %arg1[%c0_21, %c0_22, %c0_23] : memref<1x32x256xf32, #tpu.memory_space<vmem>>, vector<1x32x256xf32>
    %37 = vector.shape_cast %35 : vector<1x32xf32> to vector<1x32x1xf32>
    %38 = vector.broadcast %37 : vector<1x32x1xf32> to vector<1x32x256xf32>
    %39 = arith.mulf %36, %38 : vector<1x32x256xf32>
    %c0_24 = arith.constant 0 : index
    %c0_25 = arith.constant 0 : index
    %c0_26 = arith.constant 0 : index
    %40 = vector.load %arg4[%c0_24, %c0_25, %c0_26] : memref<1x32x256xf32, #tpu.memory_space<vmem>>, vector<1x32x256xf32>
    tpu.vector_store %arg4[%c0_24, %c0_25, %c0_26], %39 {strides = array<i32>} : memref<1x32x256xf32, #tpu.memory_space<vmem>>, vector<1x32x256xf32>,
    return
  }
  func.func @transform_0(%arg0: i32) -> (i32, i32, i32) {
    %c0_i32 = arith.constant 0 : i32
    %c0_i32_0 = arith.constant 0 : i32
    %c0_i32_1 = arith.constant 0 : i32
    return %arg0, %c0_i32, %c0_i32_0 : i32, i32, i32
  }
  func.func @transform_1(%arg0: i32) -> (i32, i32) {
    %c0_i32 = arith.constant 0 : i32
    %c0_i32_0 = arith.constant 0 : i32
    %c0_i32_1 = arith.constant 0 : i32
    return %c0_i32, %c0_i32_0 : i32, i32
  }
  func.func @transform_2(%arg0: i32) -> (i32, i32) {
    %c0_i32 = arith.constant 0 : i32
    %c0_i32_0 = arith.constant 0 : i32
    %c0_i32_1 = arith.constant 0 : i32
    return %c0_i32, %c0_i32_0 : i32, i32
  }
  func.func @transform_3(%arg0: i32) -> (i32, i32, i32) {
    %c0_i32 = arith.constant 0 : i32
    %c0_i32_0 = arith.constant 0 : i32
    %c0_i32_1 = arith.constant 0 : i32
    return %arg0, %c0_i32, %c0_i32_0 : i32, i32, i32
  }
}

</mosaic_0001>

<bundles_post_ra>
// kernel: tpu_custom_call.1
= control target key start
LH: loop header
LB: loop body
LE: loop exit
PB: predicated region body
PF: predicated region fallthrough
CT: control target
= control target key end

     0   :  { %8 = vsyncpa [#allocation3], 0  ;;  %s1255_s0 = inlined_call_operand.hbm [shape: f32[2,32,256], index: 0, kind: input, shape index: {}]   ;;  %s1256_s1 = inlined_call_operand.vmem [shape: f32[32,4], index: 1, kind: input, shape index: {}]   ;;  %s1257_s2 = inlined_call_operand.vmem [shape: f32[4,32], index: 2, kind: input, shape index: {}]   ;;  %s1258_s3 = inlined_call_operand.hbm [shape: f32[2,32,256], index: 3, kind: output, shape index: {}]  }
   0x1   :  { %10 = vsyncpa [#allocation3 + $0x1], 0 }
   0x2   :  { %11 = vsyncpa [#allocation4], 0 }
   0x3   :  { %13 = vsyncpa [#allocation4 + $0x1], 0  ;;  %s1009_s12 = smov 0   ;;  %s1011_s13 = smov 0  }
   0x4   :  { %s1013_s14 = smov 0   ;;  %s1015_s15 = smov 0  }
   0x5 LB: > { %s1030_s16 = sadd.s32 4294967295, %s978_s15   ;;  %s739_s17 = sadd.s32 4294967294, %s978_s15   ;;  %s978_s15 = sphi %s1015_s15, %s1271_s15   ;;  %s974_s14 = sphi %s1013_s14, %s1270_s14   ;;  %s970_s13 = sphi %s1011_s13, %s1269_s13   ;;  %s966_s12 = sphi %s1009_s12, %s1268_s12  }
   0x6   : > { %s1034_s18 = sadd.s32 1, %s978_s15   ;;  %s26_s19 = sadd.s32 1, %s974_s14 }
   0x7   : > { %s23_s20 = ssub.s32 %s978_s15, %s1034_s18  ;;  %p33_p0 = scmp.ne.s32.totalorder %s974_s14, %s970_s13 }
   0x8   : > { %p24_p1 = scmp.eq.s32.totalorder %s23_s20, 0  ;;  %p34_p2 = scmp.eq.s32.totalorder %s978_s15, 0 }
   0x9   : > { %p39_p3 = scmp.ne.s32.totalorder %s970_s13, %s966_s12  ;;  %p40_p4 = scmp.eq.s32.totalorder %s1030_s16, 0 }
   0xa   : > { %s1046_s21 = scalar_select %p24_p1, %s974_s14, %s26_s19  }
   0xb   : > { %p1048_p5 = por %p34_p2, %p33_p0  ;;  %p1052_p6 = por %p40_p4, %p39_p3 }
   0xc   : > { %p105_p7 = scmp.eq.s32.totalorder %s1030_s16, 1  ;;  %p111_p8 = scmp.eq.s32.totalorder %s739_s17, 1 }
   0xd   : > { %p837_p10 = scmp.lt.s32.totalorder %s978_s15, 2  ;;  %s137_s26 = sand.u32 1, %s974_s14  }
   0xe   : > { %p1059_p11 = por %p105_p7, %p33_p0  ;;  %p1063_p12 = por %p111_p8, %p39_p3 }
   0xf   : > { %s764_s27 = sshll.u32 %s978_s15, 10  ;;  %s742_s28 = sshll.u32 %s137_s26, 6 }
  0x10   : > { %s1262_s24 = scalar_select %p1059_p11, 1, 0 }
  0x11   : > { %s1263_s25 = scalar_select %p1063_p12, 1, 0 }
  0x12   : > { %s1072_s4 = scalar_lea.hbm %s1255_s0, %s764_s27  ;;  %s141_s5 = scalar_lea.vmem [#allocation2], %s742_s28 }
  0x13   : > { %s148_s6 = sshll.u32 %s141_s5, 4  ;;  %p1076_p13 = pnand %p837_p10, %p1048_p5  ;;  %s1080_s6 = int_to_ptr.vmem [resolvable:$true] %s148_s6 }
  0x14   : > { %s1082_s8 = scalar_lea.sflag [#allocation3], %s137_s26  ;;  %s882_s9 = scalar_lea.hbm %s1072_s4, 1024 }
  0x15   : > { %p883_p0 = scmp.ne.s32.totalorder %s1072_s4, %s882_s9  ;;  %p884_p1 = pneg %p1076_p13 }
  0x16   : > { %s887_s17 = scalar_lea.hbm %s1255_s0, 2048  ;;  %p888_p4 = scmp.lt.u32.totalorder %s1072_s4, %s1255_s0 }
  0x17   : > { %p885_p2 = pnand %p884_p1, %p883_p0  ;;  %p889_p5 = scmp.lt.u32.totalorder %s887_s17, %s882_s9 }
  0x18   : > { %p891_p8 = scmp.lt.u32.totalorder %s882_s9, %s1072_s4 }
  0x19   : > { %p886_p3 = pneg %p885_p2  ;;  %p890_p7 = por %p889_p5, %p888_p4 }
  0x1b   : > { %p892_p10 = por %p891_p8, %p890_p7 }
  0x1d   : > { %p893_p9 = pnand %p892_p10, %p886_p3 }
  0x1f   : > { %896 = shalt.err (!%p893_p9)
}
  0x20   : > { %s897_s22 = scalar_lea.vmem %s1080_s6, 1024  ;;  %s980_s26 = smov [#allocation2]  }
  0x21   : > { %p898_p0 = scmp.ne.s32.totalorder %s1080_s6, %s897_s22  ;;  %s902_s27 = sshll.u32 %s980_s26, 4  ;;  %s903_s27 = int_to_ptr.vmem [resolvable:$false] %s902_s27 }
  0x22   : > { %s904_s28 = scalar_lea.vmem %s903_s27, 2048  ;;  %p905_p11 = scmp.lt.s32.totalorder %s1080_s6, %s903_s27 }
  0x23   : > { %p900_p2 = pnand %p898_p0, %p884_p1  ;;  %p906_p4 = scmp.lt.s32.totalorder %s904_s28, %s897_s22 }
  0x25   : > { %p901_p12 = pneg %p900_p2  ;;  %p907_p5 = por %p906_p4, %p905_p11 }
  0x27   : > { %p908_p7 = pnand %p907_p5, %p901_p12 }
  0x29   : > { %911 = shalt.err (!%p908_p7)
}
  0x2a   : > { %s981_s29 = smov 256   ;;  %s982_s30 = smov 16  }
  0x2b   : > { %832 = dma.hbm_to_vmem [thread:$0]  (!%p1076_p13), %s1072_s4, 1024, %s1080_s6, %s1082_s8, %s981_s29, %s981_s29, %s982_s30  }
  0x2c   : > { %p745_p9 = scmp.ge.s32.totalorder %s978_s15, 1  ;;  %p156_p1 = scmp.lt.s32.totalorder %s978_s15, 3 }
  0x2e   : > { %p157_p3 = pnand %p745_p9, %p156_p1 }
  0x2f   : > { %s1113_s5 = sand.u32 (!%p157_p3), 1, %s970_s13  }
  0x30   : > { %160 = sbr.rel (%p157_p3) target bundleno = 828 (0x33c), region = 32  ;;  %s746_s9 = sshll.u32 (!%p157_p3), %s1113_s5, 6 }
  0x31   : > { %s163_s10 = scalar_lea.sflag (!%p157_p3), [#allocation3], %s1113_s5  ;;  %s166_s11 = scalar_lea.vmem (!%p157_p3), [#allocation2], %s746_s9 }
  0x37   : > { %957 = dma.done.wait (%p1052_p6), %s163_s10, 1024  }
  0x38   : > { %959 = vsyncadd (%p1052_p6), %s163_s10, 4294966272  ;;  %v1123_v0 = vld [vmem:[%s166_s11 + $0x8] sm:$0xff]  ;;  %v1125_v1 = vld [vmem:[%s166_s11] sm:$0xff]  ;;  %v983_v8 = vmov 0.0|0.0   ;;  %vm984_vm0 = vmmov 0   ;;  %v985_v15 = vmov 0.0   ;;  %v255_v18 = vlaneseq }
  0x39   : > { %218 = vadd.xlane.f32.xlu1 %v1123_v0  ;;  %193 = vadd.xlane.f32.xlu0 %v1125_v1  ;;  %v1129_v2 = vld [vmem:[%s166_s11 + $0x18] sm:$0xff]  ;;  %v1131_v3 = vld [vmem:[%s166_s11 + $0x10] sm:$0xff]  ;;  %v1135_v4 = vld [vmem:[%s166_s11 + $0x28] sm:$0xff]  ;;  %vm266_vm1 = vcmask 130112   ;;  %vm273_vm2 = vcmask 195712   ;;  %vm280_vm3 = vcmask 261312  }
  0x3a   : > { %v1137_v5 = vld [vmem:[%s166_s11 + $0x20] sm:$0xff]  ;;  %v1141_v6 = vld [vmem:[%s166_s11 + $0x30] sm:$0xff]  ;;  %v1145_v7 = vld [vmem:[%s166_s11 + $0x38] sm:$0xff]  ;;  %812 = vmatprep.subr.bf16.mxu0 %v983_v8  ;;  %818 = vmatprep.subr.bf16.mxu1 %v983_v8  ;;  %v256_v21 = vand.u32 127, %v255_v18  ;;  %v1173_v28 = vshrl.u32 %v255_v18, 7  ;;  %vm282_vm4 = vcmask 261120  }
  0x3b   : > { %v246_v9 = vld [vmem:[%s1256_s1] sm:$0xff]  ;;  %v247_v10 = vld [vmem:[%s1256_s1 + $0x8] sm:$0xff]  ;;  %v248_v12 = vld [vmem:[%s1256_s1 + $0x10] sm:$0xff]  ;;  %788 = vmatprep.mubr.msk.f32.mxu0 %vm984_vm0, %v985_v15  ;;  %799 = vmatprep.mubr.msk.f32.mxu1 %vm984_vm0, %v985_v15  ;;  %vm456_vm5 = vcmask 1043456   ;;  %vm452_vm6 = vcmask 31744   ;;  %s188_s27 = scalar_lea.vmem [#allocation5], %s746_s9 }
  0x3c   : > { %v813_v11 = vpack.c.bf16 %v247_v10, %v246_v9  ;;  %v249_v13 = vld [vmem:[%s1256_s1 + $0x18] sm:$0xff]  ;;  %v261_v24 = vadd.s32 4294967288, %v256_v21  ;;  %v268_v26 = vadd.s32 4294967280, %v256_v21  ;;  %v275_v34 = vadd.s32 4294967272, %v256_v21  ;;  %s666_s28 = sshll.u32 %s188_s27, 4  ;;  %s765_s29 = sshll.u32 %s1030_s16, 10  ;;  %s1204_s28 = int_to_ptr.vmem [resolvable:$true] %s666_s28 }
  0x3d   : > { %220 = vadd.xlane.f32.xlu1 %v1129_v2  ;;  %195 = vadd.xlane.f32.xlu0 %v1131_v3  ;;  %v816_v14 = vpack.c.bf16 %v249_v13, %v248_v12  ;;  %v259_v37 = vsub.s32 %v256_v21, %v1173_v28  ;;  %v250_v12 = vld [vmem:[%s1257_s2] sm:$0xf]  ;;  %s1209_s10 = scalar_lea.hbm %s1258_s3, %s765_s29  ;;  %s653_s16 = scalar_lea.sflag [#allocation4], %s1113_s5 }
  0x3e   : > { %814 = vmatpush3.bf16.msra.mxu0 %v813_v11  ;;  %820 = vmatpush3.bf16.msra.mxu1 %v813_v11  ;;  %v264_v32 = vsub.s32 %v261_v24, %v1173_v28  ;;  %v271_v35 = vsub.s32 %v268_v26, %v1173_v28  ;;  %v278_v42 = vsub.s32 %v275_v34, %v1173_v28  ;;  %s912_s11 = scalar_lea.vmem %s1204_s28, 1024  ;;  %p1265_p11 = scmp.ne.s32.totalorder %s1262_s24, 0 }
  0x3f   : > { %815 = vmatprep.subr.bf16.mxu0 %v983_v8  ;;  %821 = vmatprep.subr.bf16.mxu1 %v983_v8  ;;  %p913_p6 = scmp.ne.s32.totalorder %s1204_s28, %s912_s11  ;;  %s986_s23 = smov [#allocation5]  }
  0x40   : > { %s916_s4 = sshll.u32 %s986_s23, 4  ;;  %s917_s4 = int_to_ptr.vmem [resolvable:$false] %s916_s4 }
  0x41   : > { %222 = vadd.xlane.f32.xlu1 %v1135_v4  ;;  %197 = vadd.xlane.f32.xlu0 %v1137_v5  ;;  %p914_p12 = pnand %p913_p6, %p1265_p11  ;;  %s918_s6 = scalar_lea.vmem %s917_s4, 2048 }
  0x42   : > { %817 = vmatpush3.bf16.msra.mxu0 %v816_v14  ;;  %823 = vmatpush3.bf16.msra.mxu1 %v816_v14  ;;  %p919_p8 = scmp.lt.s32.totalorder %s1204_s28, %s917_s4  ;;  %p920_p10 = scmp.lt.s32.totalorder %s918_s6, %s912_s11 }
  0x43   : > { %807 = vmatprep.subr.mxu0 %v985_v15  ;;  %802 = vmatprep.subr.mxu1 %v985_v15  ;;  %p915_p13 = pneg %p914_p12 }
  0x44   : > { %p921_p0 = por %p920_p10, %p919_p8 }
  0x45   : > { %205 = vmax.xlane.f32.xlu1 %v1125_v1  ;;  %199 = vadd.xlane.f32.xlu0 %v1141_v6 }
  0x46   : > { %p922_p2 = pnand %p921_p0, %p915_p13 }
  0x49   : > { %224 = vadd.xlane.f32.xlu1 %v1145_v7  ;;  %207 = vmax.xlane.f32.xlu0 %v1131_v3 }
  0x4d   : > { %232 = vmax.xlane.f32.xlu1 %v1129_v2  ;;  %230 = vmax.xlane.f32.xlu0 %v1123_v0 }
  0x51   : > { %234 = vmax.xlane.f32.xlu1 %v1135_v4  ;;  %209 = vmax.xlane.f32.xlu0 %v1137_v5 }
  0x55   : > { %236 = vmax.xlane.f32.xlu1 %v1145_v7  ;;  %211 = vmax.xlane.f32.xlu0 %v1141_v6 }
  0xc6   : > { %v219_v16 = vpop.xlane.xlu1 %218  ;;  %v194_v17 = vpop.xlane.xlu0 %193 }
  0xc7   : > { %v226_v29 = vadd.f32 %v219_v16, %v194_v17 }
  0xc9   : > { %v242_v38 = vmul.f32 0.00390625, %v226_v29 }
  0xca   : > { %v221_v19 = vpop.xlane.xlu1 %220  ;;  %v196_v20 = vpop.xlane.xlu0 %195 }
  0xcb   : > { %v227_v25 = vadd.f32 %v221_v19, %v196_v20  ;;  %v260_v45 = vrot.slane %v242_v38, %v259_v37 }
  0xcd   : > { %v243_v33 = vmul.f32 0.00390625, %v227_v25 }
  0xce   : > { %v223_v22 = vpop.xlane.xlu1 %222  ;;  %v198_v23 = vpop.xlane.xlu0 %197 }
  0xcf   : > { %v228_v27 = vadd.f32 %v223_v22, %v198_v23  ;;  %v265_v41 = vrot.slane %v243_v33, %v264_v32 }
  0xd1   : > { %v244_v36 = vmul.f32 0.00390625, %v228_v27  ;;  %v267_v49 = vsel %vm266_vm1, %v265_v41, %v260_v45  ;;  %v619_v27 = vsub.s32 0, %v1173_v28 }
  0xd2   : > { %v206_v30 = vpop.xlane.xlu1 %205  ;;  %v200_v31 = vpop.xlane.xlu0 %199 }
  0xd3   : > { %v272_v44 = vrot.slane %v244_v36, %v271_v35 }
  0xd5   : > { %v274_v51 = vsel %vm273_vm2, %v272_v44, %v267_v49 }
  0xd6   : > { %v225_v39 = vpop.xlane.xlu1 %224  ;;  %v208_v40 = vpop.xlane.xlu0 %207 }
  0xd7   : > { %v229_v43 = vadd.f32 %v225_v39, %v200_v31 }
  0xd9   : > { %v245_v46 = vmul.f32 0.00390625, %v229_v43 }
  0xda   : > { %v233_v47 = vpop.xlane.xlu1 %232  ;;  %v231_v48 = vpop.xlane.xlu0 %230 }
  0xdb   : > { %v279_v50 = vrot.slane %v245_v46, %v278_v42  ;;  %v239_v52 = vmax.f32 %v208_v40, %v233_v47  ;;  %v238_v53 = vmax.f32 %v206_v30, %v231_v48 }
  0xdd   : > { %v281_v54 = vsel %vm280_vm3, %v279_v50, %v274_v51  ;;  %v367_v58 = vrot.slane %v239_v52, %v264_v32  ;;  %v363_v59 = vrot.slane %v238_v53, %v259_v37 }
  0xde   : > { %v235_v55 = vpop.xlane.xlu1 %234  ;;  %789 = vmatmul.mubr.msk.f32.vlgmr.msra.gmra.mrb[0].mxu0 %vm282_vm4, %v281_v54  ;;  %v210_v56 = vpop.xlane.xlu0 %209 }
  0xdf   : > { %v240_v57 = vmax.f32 %v210_v56, %v235_v55  ;;  %809 = vmatprep.mubr.msk.f32.mxu0 %vm984_vm0, %v985_v15  ;;  %v368_v8 = vsel %vm266_vm1, %v367_v58, %v363_v59  ;;  %808 = vmatpush3.msk.msra.mxu0 %vm456_vm5, %v250_v12 }
  0xe1   : > { %v372_v60 = vrot.slane %v240_v57, %v271_v35 }
  0xe2   : > { %v237_v61 = vpop.xlane.xlu1 %236  ;;  %v212_v62 = vpop.xlane.xlu0 %211 }
  0xe3   : > { %v241_v63 = vmax.f32 %v212_v62, %v237_v61  ;;  %v373_v10 = vsel %vm273_vm2, %v372_v60, %v368_v8 }
  0xe5   : > { %v377_v9 = vrot.slane %v241_v63, %v278_v42 }
  0xe7   : > { %v378_v11 = vsel %vm280_vm3, %v377_v9, %v373_v10 }
  0xe8   : > { %800 = vmatmul.mubr.msk.f32.vlgmr.msra.gmra.mrb[0].mxu1 %vm282_vm4, %v378_v11 }
  0xe9   : > { %804 = vmatprep.mubr.msk.f32.mxu1 %vm984_vm0, %v985_v15  ;;  %803 = vmatpush3.msk.msra.mxu1 %vm456_vm5, %v250_v12 }
 0x1b1   : > { %v351_v13 = vpop.f32.mrb[0].mxu0 }
 0x1b2   : > { %v355_v14 = vmax.f32 %v351_v13, 0.0  ;;  %v790_v16 = vpop.f32.mrb[1].mxu0 }
 0x1b4   : > { %810 = vmatmul.mubr.msk.f32.vlgmr.msra.gmra.mrb[2].mxu0 %vm452_vm6, %v355_v14 }
 0x1bb   : > { %v447_v17 = vpop.f32.mrb[0].mxu1 }
 0x1bc   : > { %v451_v18 = vmax.f32 %v447_v17, 0.0  ;;  %v801_v19 = vpop.f32.mrb[1].mxu1 }
 0x1be   : > { %805 = vmatmul.mubr.msk.f32.vlgmr.msra.gmra.mrb[2].mxu1 %vm452_vm6, %v451_v18 }
 0x287   : > { %v599_v20 = vpop.f32.mrb[2].mxu0 }
 0x288   : > { %v811_v21 = vpop.f32.mrb[3].mxu0 }
 0x291   : > { %v526_v22 = vpop.f32.mrb[2].mxu1 }
 0x292   : > { %v600_v15 = vadd.f32 %v599_v20, %v526_v22  ;;  %v806_v23 = vpop.f32.mrb[3].mxu1 }
 0x294   : > { %v758_v24 = vmul.f32 -1.442695, %v600_v15 }
 0x296   : > { %878 = vpow2.f32 %v758_v24 }
 0x2a0   : > { %v879_v25 = vpop.eup %878 }
 0x2a1   : > { %v606_v26 = vadd.f32 1.0, %v879_v25 }
 0x2a3   : > { %880 = vrcp.f32 %v606_v26 }
 0x2ad   : > { %v881_v29 = vpop.eup %880 }
 0x2ae   : > { %v620_v30 = vrot.slane %v881_v29, %v619_v27 }
 0x2b0   : > { %626 = vbcast.lane.b32.xlu1 %v620_v30, 264  ;;  %622 = vbcast.lane.b32.xlu0 %v620_v30, 256 }
 0x2b4   : > { %630 = vbcast.lane.b32.xlu1 %v620_v30, 272 }
 0x2b8   : > { %634 = vbcast.lane.b32.xlu1 %v620_v30, 280 }
 0x322   : > { %v627_v31 = vpop.permute.xlu1 %626  ;;  %v623_v32 = vpop.permute.xlu0 %622 }
 0x323   : > { %v638_v33 = vmul.f32 %v627_v31, %v1131_v3  ;;  %v639_v34 = vmul.f32 %v1129_v2, %v627_v31  ;;  %v636_v35 = vmul.f32 %v623_v32, %v1125_v1  ;;  %v637_v36 = vmul.f32 %v1123_v0, %v623_v32 }
 0x325   : > { %646 = vst [vmem:[%s188_s27 + $0x10] sm:$0xff] %v638_v33  ;;  %647 = vst [vmem:[%s188_s27 + $0x18] sm:$0xff] %v639_v34 }
 0x326   : > { %644 = vst [vmem:[%s188_s27] sm:$0xff] %v636_v35  ;;  %645 = vst [vmem:[%s188_s27 + $0x8] sm:$0xff] %v637_v36  ;;  %v631_v28 = vpop.permute.xlu1 %630 }
 0x327   : > { %v640_v37 = vmul.f32 %v631_v28, %v1137_v5  ;;  %v641_v3 = vmul.f32 %v1135_v4, %v631_v28 }
 0x329   : > { %648 = vst [vmem:[%s188_s27 + $0x20] sm:$0xff] %v640_v37  ;;  %649 = vst [vmem:[%s188_s27 + $0x28] sm:$0xff] %v641_v3 }
 0x32a   : > { %v635_v0 = vpop.permute.xlu1 %634 }
 0x32b   : > { %v642_v1 = vmul.f32 %v635_v0, %v1141_v6  ;;  %v643_v2 = vmul.f32 %v1145_v7, %v635_v0 }
 0x32d   : > { %650 = vst [vmem:[%s188_s27 + $0x30] sm:$0xff] %v642_v1  ;;  %651 = vst [vmem:[%s188_s27 + $0x38] sm:$0xff] %v643_v2 }
 0x32e   : > { %925 = shalt.err (!%p922_p2)
}
 0x32f   : > { %s926_s7 = scalar_lea.hbm %s1209_s10, 1024  ;;  %s930_s19 = scalar_lea.hbm %s1258_s3, 2048 }
 0x330   : > { %p927_p4 = scmp.ne.s32.totalorder %s1209_s10, %s926_s7  ;;  %p931_p9 = scmp.lt.u32.totalorder %s1209_s10, %s1258_s3 }
 0x331   : > { %p932_p1 = scmp.lt.u32.totalorder %s930_s19, %s926_s7  ;;  %p934_p6 = scmp.lt.u32.totalorder %s926_s7, %s1209_s10 }
 0x332   : > { %p928_p5 = pnand %p927_p4, %p1265_p11 }
 0x333   : > { %p933_p3 = por %p932_p1, %p931_p9 }
 0x334   : > { %p929_p7 = pneg %p928_p5 }
 0x335   : > { %p935_p12 = por %p934_p6, %p933_p3 }
 0x337   : > { %p936_p13 = pnand %p935_p12, %p929_p7 }
 0x339   : > { %939 = shalt.err (!%p936_p13)
}
 0x33a   : > { %s987_s26 = smov 256   ;;  %s988_s27 = smov 16  }
 0x33b   : > { %827 = dma.vmem_to_hbm [thread:$0]  (%p1265_p11), %s1204_s28, 1024, %s1209_s10, %s653_s16, %s987_s26, %s987_s26, %s988_s27  }
 0x33c PF: > { %s681_s29 = sand.u32 1, %s966_s12   ;;  %p1266_p8 = scmp.ne.s32.totalorder %s1263_s25, 0 }
 0x33d   : > { %p1267_p10 = scmp.ge.s32.totalorder %s978_s15, 2  ;;  %s682_s30 = scalar_lea.sflag [#allocation4], %s681_s29 }
 0x33f   : > { %p834_p0 = pnand %p1267_p10, %p1266_p8 }
 0x341   : > { %961 = dma.done.wait (!%p834_p0), %s682_s30, 1024  }
 0x342   : > { %963 = vsyncadd (!%p834_p0), %s682_s30, 4294966272  ;;  %p16_p2 = scmp.ge.s32.totalorder %s1034_s18, 4   ;;  %s1268_s12 = smov %s970_s13 }
 0x343   : > { %s1269_s13 = smov %s974_s14  ;;  %s1270_s14 = smov %s1046_s21 }
 0x344   : > { %s1271_s15 = smov %s1034_s18  ;;  %18 = sbr.rel (!%p16_p2) target bundleno = 5 (0x5), region = 78 }
 0x34b   :  { %687 = vsyncpa [#allocation3], 1 }
 0x34c   :  { %689 = vsyncpa [#allocation3 + $0x1], 1 }
 0x34d   :  { %690 = vsyncpa [#allocation4], 1 }
 0x34e   :  { %692 = vsyncpa [#allocation4 + $0x1], 1 }

</bundles_post_ra>
